<compile_context>
chip_gen: v6e
topology: v6e:2x2x1
jax: 0.10.0
libtpu: 0.0.40
codegen_flags: <defaults>
</compile_context>

<pallas_src>
import functools
import numpy as np
import jax
import jax.numpy as jnp
from jax import lax
from jax.experimental import pallas as pl
from jax.experimental.pallas import tpu as pltpu

PAD = 0
LN_EPS = 1e-5
NEG_FILL = -1e30        # finite sentinel instead of -inf (avoids NaN on fully-masked rows)
MXU_BF16 = True         # cast MXU operands to bf16 (f32 accumulation); elementwise stays f32


def _mxu(x):
    return x.astype(jnp.bfloat16) if MXU_BF16 else x


def _pick_tile(dim, target, align):
    """Largest divisor of `dim` that is <= target and a multiple of `align`,
    else the full dim (a full-extent block is always legal)."""
    if dim <= target:
        return dim
    t = (target // align) * align
    while t >= align:
        if dim % t == 0:
            return t
        t -= align
    return dim


# ----------------------------------------------------------------------------
# Kernel A: tiled linear  y = x @ W + b  (optional ReLU)
# ----------------------------------------------------------------------------
def _linear_kernel(x_ref, w_ref, b_ref, o_ref, acc_ref, *, relu):
    @pl.when(pl.program_id(2) == 0)
    def _():
        acc_ref[...] = jnp.zeros_like(acc_ref)

    acc_ref[...] += jnp.dot(_mxu(x_ref[...]), _mxu(w_ref[...]),
                            preferred_element_type=jnp.float32)

    @pl.when(pl.program_id(2) == pl.num_programs(2) - 1)
    def _():
        y = acc_ref[...] + b_ref[...]
        if relu:
            y = jnp.maximum(y, 0.0)
        o_ref[...] = y.astype(o_ref.dtype)


def _pallas_linear(x, w, b, relu=False, tm=256, tn=256, tk=512):
    M, K = x.shape
    N = w.shape[1]
    tm = _pick_tile(M, tm, 8)
    tn = _pick_tile(N, tn, 128)
    tk = _pick_tile(K, tk, 128)
    grid = (M // tm, N // tn, K // tk)
    return pl.pallas_call(
        functools.partial(_linear_kernel, relu=relu),
        out_shape=jax.ShapeDtypeStruct((M, N), jnp.float32),
        grid=grid,
        in_specs=[
            pl.BlockSpec((tm, tk), lambda i, j, k: (i, k)),
            pl.BlockSpec((tk, tn), lambda i, j, k: (k, j)),
            pl.BlockSpec((1, tn), lambda i, j, k: (0, j)),
        ],
        out_specs=pl.BlockSpec((tm, tn), lambda i, j, k: (i, j)),
        scratch_shapes=[pltpu.VMEM((tm, tn), jnp.float32)],
        compiler_params=pltpu.CompilerParams(
            dimension_semantics=("parallel", "parallel", "arbitrary")),
    )(x, w, b)


# ----------------------------------------------------------------------------
# Kernel B: output projection fused with residual add + LayerNorm + non-pad mask
# ----------------------------------------------------------------------------
def _proj_add_ln_kernel(x_ref, w_ref, b_ref, res_ref, g_ref, beta_ref, npm_ref,
                        o_ref, acc_ref):
    @pl.when(pl.program_id(1) == 0)
    def _():
        acc_ref[...] = jnp.zeros_like(acc_ref)

    acc_ref[...] += jnp.dot(_mxu(x_ref[...]), _mxu(w_ref[...]),
                            preferred_element_type=jnp.float32)

    @pl.when(pl.program_id(1) == pl.num_programs(1) - 1)
    def _():
        y = acc_ref[...] + b_ref[...] + res_ref[...]
        mu = jnp.mean(y, axis=-1, keepdims=True)
        var = jnp.mean((y - mu) ** 2, axis=-1, keepdims=True)
        y = (y - mu) * lax.rsqrt(var + LN_EPS)
        y = y * g_ref[...] + beta_ref[...]
        o_ref[...] = (y * npm_ref[...]).astype(o_ref.dtype)


def _pallas_proj_add_ln(x, w, b, res, g, beta, npm, tm=256, tk=512):
    M, K = x.shape
    D = w.shape[1]
    tm = _pick_tile(M, tm, 8)
    tk = _pick_tile(K, tk, 128)
    grid = (M // tm, K // tk)
    return pl.pallas_call(
        _proj_add_ln_kernel,
        out_shape=jax.ShapeDtypeStruct((M, D), jnp.float32),
        grid=grid,
        in_specs=[
            pl.BlockSpec((tm, tk), lambda i, k: (i, k)),
            pl.BlockSpec((tk, D), lambda i, k: (k, 0)),
            pl.BlockSpec((1, D), lambda i, k: (0, 0)),
            pl.BlockSpec((tm, D), lambda i, k: (i, 0)),
            pl.BlockSpec((1, D), lambda i, k: (0, 0)),
            pl.BlockSpec((1, D), lambda i, k: (0, 0)),
            pl.BlockSpec((tm, 1), lambda i, k: (i, 0)),
        ],
        out_specs=pl.BlockSpec((tm, D), lambda i, k: (i, 0)),
        scratch_shapes=[pltpu.VMEM((tm, D), jnp.float32)],
        compiler_params=pltpu.CompilerParams(
            dimension_semantics=("parallel", "arbitrary")),
    )(x, w, b, res, g, beta, npm)


# ----------------------------------------------------------------------------
# Kernel C: fused position-wise FFN (w1 + ReLU + w2) + residual + LN + non-pad mask
# ----------------------------------------------------------------------------
def _ffn_kernel(x_ref, w1_ref, b1_ref, w2_ref, b2_ref, g_ref, beta_ref, npm_ref,
                o_ref, acc_ref):
    @pl.when(pl.program_id(1) == 0)
    def _():
        acc_ref[...] = jnp.zeros_like(acc_ref)

    x = x_ref[...]                                            # (tm, D) — also the residual
    h = jnp.dot(_mxu(x), _mxu(w1_ref[...]), preferred_element_type=jnp.float32)
    h = jnp.maximum(h + b1_ref[...], 0.0)                     # ReLU, (tm, tk) never hits HBM
    acc_ref[...] += jnp.dot(_mxu(h), _mxu(w2_ref[...]),
                            preferred_element_type=jnp.float32)

    @pl.when(pl.program_id(1) == pl.num_programs(1) - 1)
    def _():
        y = acc_ref[...] + b2_ref[...] + x                    # residual add
        mu = jnp.mean(y, axis=-1, keepdims=True)
        var = jnp.mean((y - mu) ** 2, axis=-1, keepdims=True)
        y = (y - mu) * lax.rsqrt(var + LN_EPS)
        y = y * g_ref[...] + beta_ref[...]
        o_ref[...] = (y * npm_ref[...]).astype(o_ref.dtype)


def _pallas_ffn(x, w1, b1, w2, b2, g, beta, npm, tm=256, tk=512):
    M, D = x.shape
    Dinner = w1.shape[1]
    tm = _pick_tile(M, tm, 8)
    tk = _pick_tile(Dinner, tk, 128)
    grid = (M // tm, Dinner // tk)
    return pl.pallas_call(
        _ffn_kernel,
        out_shape=jax.ShapeDtypeStruct((M, D), jnp.float32),
        grid=grid,
        in_specs=[
            pl.BlockSpec((tm, D), lambda i, k: (i, 0)),
            pl.BlockSpec((D, tk), lambda i, k: (0, k)),
            pl.BlockSpec((1, tk), lambda i, k: (0, k)),
            pl.BlockSpec((tk, D), lambda i, k: (k, 0)),
            pl.BlockSpec((1, D), lambda i, k: (0, 0)),
            pl.BlockSpec((1, D), lambda i, k: (0, 0)),
            pl.BlockSpec((1, D), lambda i, k: (0, 0)),
            pl.BlockSpec((tm, 1), lambda i, k: (i, 0)),
        ],
        out_specs=pl.BlockSpec((tm, D), lambda i, k: (i, 0)),
        scratch_shapes=[pltpu.VMEM((tm, D), jnp.float32)],
        compiler_params=pltpu.CompilerParams(
            dimension_semantics=("parallel", "arbitrary")),
    )(x, w1, b1, w2, b2, g, beta, npm)


# ----------------------------------------------------------------------------
# Kernel D: scaled dot-product attention — all heads of one batch element per step
# ----------------------------------------------------------------------------
def _attn_kernel(q_ref, kv_ref, m_ref, ctx_ref, attn_ref, *, n_head, d_k, d_v, scale):
    q = q_ref[0]                              # (Lq, n_head*d_k)  packed, head-major
    kv = kv_ref[0]                            # (Lk, n_head*d_k + n_head*d_v)
    m = m_ref[0]                              # (Lq, Lk) — shared across heads (not tiled)
    v_off = n_head * d_k
    for h in range(n_head):                   # static unroll over heads
        qh = q[:, h * d_k:(h + 1) * d_k]
        kh = kv[:, h * d_k:(h + 1) * d_k]
        vh = kv[:, v_off + h * d_v: v_off + (h + 1) * d_v]
        # QK^T via dot_general contracting dims — no explicit transpose of K.
        s = lax.dot_general(_mxu(qh), _mxu(kh), (((1,), (1,)), ((), ())),
                            preferred_element_type=jnp.float32) * scale
        s = jnp.where(m > 0.5, NEG_FILL, s)   # masked_fill with finite sentinel
        s_max = jnp.max(s, axis=-1, keepdims=True)
        e = jnp.exp(s - s_max)
        attn = e / jnp.sum(e, axis=-1, keepdims=True)
        ctx = jnp.dot(_mxu(attn), _mxu(vh), preferred_element_type=jnp.float32)
        ctx_ref[0, :, h * d_v:(h + 1) * d_v] = ctx
        attn_ref[h, 0, :, :] = attn


def _pallas_attention(qp, kvp, mask, n_head, d_k, d_v):
    B, Lq, _ = qp.shape
    Lk = kvp.shape[1]
    scale = 1.0 / float(np.sqrt(d_k))
    ctx, attn = pl.pallas_call(
        functools.partial(_attn_kernel, n_head=n_head, d_k=d_k, d_v=d_v, scale=scale),
        out_shape=(
            jax.ShapeDtypeStruct((B, Lq, n_head * d_v), jnp.float32),
            jax.ShapeDtypeStruct((n_head, B, Lq, Lk), jnp.float32),
        ),
        grid=(B,),
        in_specs=[
            pl.BlockSpec((1, Lq, n_head * d_k), lambda b: (b, 0, 0)),
            pl.BlockSpec((1, Lk, n_head * (d_k + d_v)), lambda b: (b, 0, 0)),
            pl.BlockSpec((1, Lq, Lk), lambda b: (b, 0, 0)),
        ],
        out_specs=(
            pl.BlockSpec((1, Lq, n_head * d_v), lambda b: (b, 0, 0)),
            pl.BlockSpec((n_head, 1, Lq, Lk), lambda b: (0, b, 0, 0)),
        ),
        compiler_params=pltpu.CompilerParams(dimension_semantics=("parallel",)),
    )(qp, kvp, mask)
    return ctx, attn


# ----------------------------------------------------------------------------
# Module building blocks (JAX glue around the kernels)
# ----------------------------------------------------------------------------
def multi_head_attention(q, kv, mask, npm, p):
    """PyTorch MultiHeadAttention semantics. q: (B, Lq, D); kv: (B, Lk, D)
    (the decoder always uses the same tensor for keys and values)."""
    n_head, d_k, d_v = p["n_head"], p["d_k"], p["d_v"]
    B, Lq, D = q.shape
    Lk = kv.shape[1]

    # Q projection (one call) and fused K|V projection (one call, concatenated weights).
    qp = _pallas_linear(q.reshape(B * Lq, D), p["wq"], p["bq"]).reshape(
        B, Lq, n_head * d_k)
    kvp = _pallas_linear(kv.reshape(B * Lk, D), p["wkv"], p["bkv"]).reshape(
        B, Lk, n_head * (d_k + d_v))

    # Attention core: heads stay packed along the feature axis, no HBM transposes.
    ctx, attn = _pallas_attention(qp, kvp, mask, n_head, d_k, d_v)

    # Output projection fused with residual add + LayerNorm + non-pad mask.
    out = _pallas_proj_add_ln(ctx.reshape(B * Lq, n_head * d_v), p["wo"], p["bo"],
                              q.reshape(B * Lq, D), p["ln_g"], p["ln_b"],
                              npm.reshape(B * Lq, 1))
    # attn is (n_head, B, Lq, Lk) head-major — contiguous reshape to (n_head*B, Lq, Lk)
    return out.reshape(B, Lq, D), attn.reshape(n_head * B, Lq, Lk)


def position_wise_ffn(x, npm, p):
    B, L, D = x.shape
    out = _pallas_ffn(x.reshape(B * L, D), p["w1"], p["b1"], p["w2"], p["b2"],
                      p["ln_g"], p["ln_b"], npm.reshape(B * L, 1))
    return out.reshape(B, L, D)


# ---- masks ------------------------------------------------------------------
def get_non_pad_mask(seq):
    return (seq != PAD).astype(jnp.float32)[:, :, None]            # (B, L, 1)


def get_attn_key_pad_mask(seq_k, seq_q):
    B, Lq = seq_q.shape
    Lk = seq_k.shape[1]
    m = (seq_k == PAD)[:, None, :]
    return jnp.broadcast_to(m, (B, Lq, Lk)).astype(jnp.float32)    # 1 = masked


def get_subsequent_mask(seq):
    B, L = seq.shape
    m = jnp.triu(jnp.ones((L, L), jnp.float32), k=1)
    return jnp.broadcast_to(m[None], (B, L, L))                     # 1 = masked


def get_sinusoid_encoding_table(n_position, d_hid, padding_idx=None):
    pos = np.arange(n_position, dtype=np.float64)[:, None]
    hid = np.arange(d_hid, dtype=np.float64)[None, :]
    table = pos / np.power(10000.0, 2.0 * (hid // 2) / d_hid)
    table[:, 0::2] = np.sin(table[:, 0::2])
    table[:, 1::2] = np.cos(table[:, 1::2])
    if padding_idx is not None:
        table[padding_idx] = 0.0
    return jnp.asarray(table, dtype=jnp.float32)


# ---- full decoder forward ----------------------------------------------------
def multi_enc_decoder_forward(params, tgt_seq, tgt_pos_seq, src_txt_seq, src_syn_seq,
                              txt_enc_output, syn_enc_output):
    non_pad_mask = get_non_pad_mask(tgt_seq)
    slf_subseq = get_subsequent_mask(tgt_seq)
    slf_keypad = get_attn_key_pad_mask(seq_k=tgt_seq, seq_q=tgt_seq)
    slf_attn_mask = ((slf_keypad + slf_subseq) > 0).astype(jnp.float32)
    dec_txt_attn_mask = get_attn_key_pad_mask(seq_k=src_txt_seq, seq_q=tgt_seq)
    dec_syn_attn_mask = get_attn_key_pad_mask(seq_k=src_syn_seq, seq_q=tgt_seq)

    dec_output = params["token_emb"][tgt_seq] + params["position_enc"][tgt_pos_seq]

    slf_attn_list, txt_attn_list, syn_attn_list = [], [], []
    for lp in params["layers"]:
        dec_output, slf_attn = multi_head_attention(
            dec_output, dec_output, slf_attn_mask, non_pad_mask, lp["slf_attn"])
        dec_output, txt_attn = multi_head_attention(
            dec_output, txt_enc_output, dec_txt_attn_mask, non_pad_mask,
            lp["txt_enc_attn"])
        dec_output, syn_attn = multi_head_attention(
            dec_output, syn_enc_output, dec_syn_attn_mask, non_pad_mask,
            lp["syn_enc_attn"])
        dec_output = position_wise_ffn(dec_output, non_pad_mask, lp["pos_ffn"])
        slf_attn_list.append(slf_attn)
        txt_attn_list.append(txt_attn)
        syn_attn_list.append(syn_attn)

    return dec_output, (slf_attn_list, txt_attn_list, syn_attn_list)


# ----------------------------------------------------------------------------
# Deterministic parameter init
# ----------------------------------------------------------------------------
def _init_linear(key, din, dout, std=0.05):
    kw, kb = jax.random.split(key)
    w = jax.random.normal(kw, (din, dout), jnp.float32) * std
    b = jax.random.normal(kb, (1, dout), jnp.float32) * std
    return w, b


def _init_mha(key, d_model, n_head, d_k, d_v):
    ks = jax.random.split(key, 4)
    wq, bq = _init_linear(ks[0], d_model, n_head * d_k)
    wk, bk = _init_linear(ks[1], d_model, n_head * d_k)
    wv, bv = _init_linear(ks[2], d_model, n_head * d_v)
    wo, bo = _init_linear(ks[3], n_head * d_v, d_model)
    return dict(wq=wq, bq=bq,
                wkv=jnp.concatenate([wk, wv], axis=1),     # fused K|V projection weight
                bkv=jnp.concatenate([bk, bv], axis=1),
                wo=wo, bo=bo,
                ln_g=jnp.ones((1, d_model), jnp.float32),
                ln_b=jnp.zeros((1, d_model), jnp.float32),
                n_head=n_head, d_k=d_k, d_v=d_v)


def _init_ffn(key, d_model, d_inner):
    k1, k2 = jax.random.split(key)
    w1, b1 = _init_linear(k1, d_model, d_inner)
    w2, b2 = _init_linear(k2, d_inner, d_model)
    return dict(w1=w1, b1=b1, w2=w2, b2=b2,
                ln_g=jnp.ones((1, d_model), jnp.float32),
                ln_b=jnp.zeros((1, d_model), jnp.float32))


def init_params(key, vocab, max_seq_len, n_layer, n_txt_head, n_syn_head,
                d_k, d_v, d_model, d_inner):
    keys = jax.random.split(key, n_layer + 1)
    token_emb = jax.random.normal(keys[0], (vocab, d_model), jnp.float32) * 0.1
    token_emb = token_emb.at[PAD].set(0.0)               # padding_idx behaviour
    layers = []
    for i in range(n_layer):
        lk = jax.random.split(keys[i + 1], 4)
        layers.append(dict(
            slf_attn=_init_mha(lk[0], d_model, n_txt_head, d_k, d_v),
            txt_enc_attn=_init_mha(lk[1], d_model, n_txt_head, d_k, d_v),
            syn_enc_attn=_init_mha(lk[2], d_model, n_syn_head, d_k, d_v),
            pos_ffn=_init_ffn(lk[3], d_model, d_inner),
        ))
    return dict(
        token_emb=token_emb,
        position_enc=get_sinusoid_encoding_table(max_seq_len + 1, d_model, padding_idx=0),
        layers=layers,
    )


# ----------------------------------------------------------------------------
if __name__ == "__main__":
    key = jax.random.PRNGKey(0)

    B, L_tgt, L_src = 2, 8, 8
    vocab = 16
    d_model, d_inner = 32, 64
    n_layer = 2
    n_txt_head, n_syn_head = 2, 2
    d_k = d_v = 16
    max_seq_len = 8

    k_par, k_tgt, k_txt, k_syn, k_te, k_se = jax.random.split(key, 6)
    params = init_params(k_par, vocab, max_seq_len, n_layer, n_txt_head, n_syn_head,
                         d_k, d_v, d_model, d_inner)

    def make_seq(k, lens, L):
        toks = jax.random.randint(k, (len(lens), L), 1, vocab)
        pos = jnp.arange(L)[None, :]
        valid = pos < jnp.asarray(lens)[:, None]
        seq = jnp.where(valid, toks, PAD).astype(jnp.int32)
        pos_seq = jnp.where(valid, pos + 1, 0).astype(jnp.int32)
        return seq, pos_seq

    tgt_seq, tgt_pos_seq = make_seq(k_tgt, [6, 8], L_tgt)
    src_txt_seq, _ = make_seq(k_txt, [8, 5], L_src)
    src_syn_seq, _ = make_seq(k_syn, [7, 8], L_src)

    txt_enc_output = jax.random.normal(k_te, (B, L_src, d_model), jnp.float32) * 0.5
    syn_enc_output = jax.random.normal(k_se, (B, L_src, d_model), jnp.float32) * 0.5

    dec_output, (slf_attns, txt_attns, syn_attns) = multi_enc_decoder_forward(
        params, tgt_seq, tgt_pos_seq, src_txt_seq, src_syn_seq,
        txt_enc_output, syn_enc_output)

    dec_output = jax.block_until_ready(dec_output)
    for a in slf_attns + txt_attns + syn_attns:
        jax.block_until_ready(a)

    assert dec_output.shape == (B, L_tgt, d_model)
    assert slf_attns[0].shape == (n_txt_head * B, L_tgt, L_tgt)
    assert txt_attns[0].shape == (n_txt_head * B, L_tgt, L_src)
    assert syn_attns[0].shape == (n_syn_head * B, L_tgt, L_src)
    assert bool(jnp.all(jnp.isfinite(dec_output)))
    for a in slf_attns + txt_attns + syn_attns:
        assert bool(jnp.all(jnp.isfinite(a)))

    print("KERNEL_OK")
</pallas_src>

<mosaic_0001>
module attributes {stable_mosaic.version = 11 : i64} {
  func.func @_linear_kernel(%arg0: i32, %arg1: i32, %arg2: i32, %arg3: memref<16x32xf32, #tpu.memory_space<vmem>>, %arg4: memref<32x32xf32, #tpu.memory_space<vmem>>, %arg5: memref<1x32xf32, #tpu.memory_space<vmem>>, %arg6: memref<16x32xf32, #tpu.memory_space<vmem>>, %arg7: memref<16x32xf32, #tpu.memory_space<vmem>>) attributes {dimension_semantics = [#tpu.dimension_semantics<parallel>, #tpu.dimension_semantics<parallel>, #tpu.dimension_semantics<arbitrary>], iteration_bounds = array<i64: 1, 1, 1>, scalar_prefetch = 0 : i64, scratch_operands = 1 : i64, tpu.core_type = #tpu.core_type<tc>, window_params = [{transform_indices = @transform_0, window_bounds = array<i64: 16, 32>}, {transform_indices = @transform_1, window_bounds = array<i64: 32, 32>}, {transform_indices = @transform_2, window_bounds = array<i64: 1, 32>}, {transform_indices = @transform_3, window_bounds = array<i64: 16, 32>}]} {
    %c0_i32 = arith.constant 0 : i32
    %0 = arith.cmpi eq, %arg2, %c0_i32 : i32
    %1 = arith.extui %0 : i1 to i32
    %c0_i32_0 = arith.constant 0 : i32
    %2 = arith.cmpi ne, %1, %c0_i32_0 : i32
    scf.if %2 {
      %cst_10 = arith.constant 0.000000e+00 : f32
      %14 = vector.broadcast %cst_10 : f32 to vector<16x32xf32>
      %c0_11 = arith.constant 0 : index
      %c0_12 = arith.constant 0 : index
      %15 = vector.load %arg7[%c0_11, %c0_12] : memref<16x32xf32, #tpu.memory_space<vmem>>, vector<16x32xf32>
      tpu.vector_store %arg7[%c0_11, %c0_12], %14 {strides = array<i32>} : memref<16x32xf32, #tpu.memory_space<vmem>>, vector<16x32xf32>,
    } else {
    }
    %c0 = arith.constant 0 : index
    %c0_1 = arith.constant 0 : index
    %3 = vector.load %arg7[%c0, %c0_1] : memref<16x32xf32, #tpu.memory_space<vmem>>, vector<16x32xf32>
    %c0_2 = arith.constant 0 : index
    %c0_3 = arith.constant 0 : index
    %4 = vector.load %arg3[%c0_2, %c0_3] : memref<16x32xf32, #tpu.memory_space<vmem>>, vector<16x32xf32>
    %5 = arith.truncf %4 : vector<16x32xf32> to vector<16x32xbf16>
    %c0_4 = arith.constant 0 : index
    %c0_5 = arith.constant 0 : index
    %6 = vector.load %arg4[%c0_4, %c0_5] : memref<32x32xf32, #tpu.memory_space<vmem>>, vector<32x32xf32>
    %7 = arith.truncf %6 : vector<32x32xf32> to vector<32x32xbf16>
    %cst = arith.constant dense<0.000000e+00> : vector<16x32xf32>
    %8 = tpu.matmul %5, %7, %cst {dimension_numbers = #tpu.dot_dimension_numbers<[1], [0], [0], [1], [0, 0, 1, 1], [], []>} : vector<16x32xbf16>, vector<32x32xbf16>, vector<16x32xf32> -> vector<16x32xf32>
    %9 = arith.addf %3, %8 : vector<16x32xf32>
    %c0_6 = arith.constant 0 : index
    %c0_7 = arith.constant 0 : index
    %10 = vector.load %arg7[%c0_6, %c0_7] : memref<16x32xf32, #tpu.memory_space<vmem>>, vector<16x32xf32>
    tpu.vector_store %arg7[%c0_6, %c0_7], %9 {strides = array<i32>} : memref<16x32xf32, #tpu.memory_space<vmem>>, vector<16x32xf32>,
    %c0_i32_8 = arith.constant 0 : i32
    %11 = arith.cmpi eq, %arg2, %c0_i32_8 : i32
    %12 = arith.extui %11 : i1 to i32
    %c0_i32_9 = arith.constant 0 : i32
    %13 = arith.cmpi ne, %12, %c0_i32_9 : i32
    scf.if %13 {
      %c0_10 = arith.constant 0 : index
      %c0_11 = arith.constant 0 : index
      %14 = vector.load %arg7[%c0_10, %c0_11] : memref<16x32xf32, #tpu.memory_space<vmem>>, vector<16x32xf32>
      %c0_12 = arith.constant 0 : index
      %c0_13 = arith.constant 0 : index
      %15 = vector.load %arg5[%c0_12, %c0_13] : memref<1x32xf32, #tpu.memory_space<vmem>>, vector<1x32xf32>
      %16 = vector.broadcast %15 : vector<1x32xf32> to vector<16x32xf32>
      %17 = arith.addf %14, %16 : vector<16x32xf32>
      %c0_14 = arith.constant 0 : index
      %c0_15 = arith.constant 0 : index
      %18 = vector.load %arg6[%c0_14, %c0_15] : memref<16x32xf32, #tpu.memory_space<vmem>>, vector<16x32xf32>
      tpu.vector_store %arg6[%c0_14, %c0_15], %17 {strides = array<i32>} : memref<16x32xf32, #tpu.memory_space<vmem>>, vector<16x32xf32>,
    } else {
    }
    return
  }
  func.func @transform_0(%arg0: i32, %arg1: i32, %arg2: i32) -> (i32, i32) {
    %c0_i32 = arith.constant 0 : i32
    return %arg0, %arg2 : i32, i32
  }
  func.func @transform_1(%arg0: i32, %arg1: i32, %arg2: i32) -> (i32, i32) {
    %c0_i32 = arith.constant 0 : i32
    return %arg2, %arg1 : i32, i32
  }
  func.func @transform_2(%arg0: i32, %arg1: i32, %arg2: i32) -> (i32, i32) {
    %c0_i32 = arith.constant 0 : i32
    %c0_i32_0 = arith.constant 0 : i32
    return %c0_i32, %arg1 : i32, i32
  }
  func.func @transform_3(%arg0: i32, %arg1: i32, %arg2: i32) -> (i32, i32) {
    %c0_i32 = arith.constant 0 : i32
    return %arg0, %arg1 : i32, i32
  }
}

</mosaic_0001>

<bundles_post_ra>
// kernel: tpu_custom_call.1
= control target key start
LH: loop header
LB: loop body
LE: loop exit
PB: predicated region body
PF: predicated region fallthrough
CT: control target
= control target key end

     0   :  { %8 = vsyncpa [#allocation4], 0  ;;  %s286_s0 = inlined_call_operand.hbm [shape: f32[16,32], index: 0, kind: input, shape index: {}]   ;;  %s287_s1 = inlined_call_operand.hbm [shape: f32[32,32], index: 1, kind: input, shape index: {}]   ;;  %s288_s2 = inlined_call_operand.vmem [shape: f32[1,32], index: 2, kind: input, shape index: {}]   ;;  %s289_s3 = inlined_call_operand.hbm [shape: f32[16,32], index: 3, kind: output, shape index: {}]  }
   0x1   :  { %9 = vsyncpa [#allocation7], 0 }
   0x2   :  { %10 = vsyncpa [#allocation5], 0  ;;  %s231_s12 = smov [#allocation3]  }
   0x3   :  { %s16_s13 = sshll.u32 %s231_s12, 4  ;;  %s17_s13 = int_to_ptr.vmem [resolvable:$true] %s16_s13 }
   0x4   :  { %s173_s14 = scalar_lea.vmem %s17_s13, 256  ;;  %p178_p1 = scmp.lt.s32.totalorder %s17_s13, %s17_s13 }
   0x5   :  { %p174_p0 = scmp.ne.s32.totalorder %s17_s13, %s173_s14  ;;  %p179_p2 = scmp.lt.s32.totalorder %s173_s14, %s173_s14 }
   0x7   :  { %p180_p3 = por %p179_p2, %p178_p1 }
   0x9   :  { %p181_p4 = pnand %p180_p3, %p174_p0 }
   0xb   :  { %184 = shalt.err (!%p181_p4)
}
   0xc   :  { %s232_s15 = smov 128   ;;  %s233_s16 = smov 8  }
   0xd   :  { %22 = dma.hbm_to_vmem [thread:$0]  %s286_s0, 256, %s17_s13, [#allocation4], %s232_s15, %s232_s15, %s233_s16  }
   0xe   :  { %s234_s19 = smov [#allocation6]  }
   0xf   :  { %s28_s20 = sshll.u32 %s234_s19, 4  ;;  %s29_s20 = int_to_ptr.vmem [resolvable:$true] %s28_s20 }
  0x10   :  { %s193_s21 = scalar_lea.vmem %s29_s20, 512  ;;  %p198_p6 = scmp.lt.s32.totalorder %s29_s20, %s29_s20 }
  0x11   :  { %p194_p5 = scmp.ne.s32.totalorder %s29_s20, %s193_s21  ;;  %p199_p7 = scmp.lt.s32.totalorder %s193_s21, %s193_s21 }
  0x13   :  { %p200_p8 = por %p199_p7, %p198_p6 }
  0x15   :  { %p201_p9 = pnand %p200_p8, %p194_p5 }
  0x17   :  { %204 = shalt.err (!%p201_p9)
}
  0x18   :  { %34 = dma.hbm_to_vmem [thread:$0]  %s287_s1, 512, %s29_s20, [#allocation7], %s232_s15, %s232_s15, %s233_s16  }
  0x19   :  { %225 = dma.done.wait [#allocation4], 256  }
  0x1a   :  { %226 = vsyncadd [#allocation4], 4294967040 }
  0x1b   :  { %227 = dma.done.wait [#allocation7], 512  }
  0x1c   :  { %228 = vsyncadd [#allocation7], 4294966784  ;;  %vm48_vm0 = vcmask 261120   ;;  %v235_v0 = vmov 0.0   ;;  %vm236_vm1 = vmmov 0   ;;  %v58_v1 = vld [vmem:[#allocation6 + $0x10] sm:$0xff] }
  0x1d   :  { %150 = vmatprep.subr.bf16.mxu0 %v235_v0  ;;  %154 = vmatprep.mubr.msk.bf16.mxu0 %vm236_vm1, %v235_v0  ;;  %49 = vst.msk [vmem:[#allocation2] sm:$0xff] %vm48_vm0, %v235_v0  ;;  %50 = vst.msk [vmem:[#allocation2 + $0x8] sm:$0xff] %vm48_vm0, %v235_v0  ;;  %v59_v2 = vld [vmem:[#allocation6 + $0x18] sm:$0xff]  ;;  %v56_v3 = vld [vmem:[#allocation6] sm:$0xff]  ;;  %s237_s24 = smov [#allocation8]  }
  0x1e   :  { %v61_v4 = vpack.c.bf16 %v59_v2, %v58_v1  ;;  %v57_v5 = vld [vmem:[#allocation6 + $0x8] sm:$0xff]  ;;  %v53_v7 = vld [vmem:[#allocation3] sm:$0xff]  ;;  %v54_v8 = vld [vmem:[#allocation3 + $0x8] sm:$0xff]  ;;  %s132_s25 = sshll.u32 %s237_s24, 4  ;;  %s133_s25 = int_to_ptr.vmem [resolvable:$true] %s132_s25 }
  0x1f   :  { %v60_v6 = vpack.c.bf16 %v57_v5, %v56_v3  ;;  %v55_v9 = vpack.c.bf16 %v54_v8, %v53_v7  ;;  %v146_v18 = vld [vmem:[%s288_s2] ss:$0 sm:$0xff]  ;;  %s205_s26 = scalar_lea.vmem %s133_s25, 256  ;;  %p210_p11 = scmp.lt.s32.totalorder %s133_s25, %s133_s25 }
  0x20   :  { %151 = vmatpush3.bf16.msra.mxu0 %v61_v4  ;;  %p206_p10 = scmp.ne.s32.totalorder %s133_s25, %s205_s26  ;;  %p211_p12 = scmp.lt.s32.totalorder %s205_s26, %s205_s26 }
  0x21   :  { %152 = vmatprep.subr.bf16.mxu0 %v235_v0 }
  0x22   :  { %p212_p13 = por %p211_p12, %p210_p11 }
  0x24   :  { %153 = vmatpush3.bf16.msra.mxu0 %v60_v6  ;;  %v51_v10 = vld [vmem:[#allocation2] sm:$0xff]  ;;  %v52_v14 = vld [vmem:[#allocation2 + $0x8] sm:$0xff]  ;;  %p213_p0 = pnand %p212_p13, %p206_p10 }
  0x27   :  { %155 = vmatmul.mubr.msk.bf16.vlgmr.msra.gmra.mxu0 %vm48_vm0, %v55_v9 }
  0xe7   :  { %v100_v11 = vpop.f32.mrf.mxu0 }
  0xe8   :  { %v107_v12 = vadd.f32 %v100_v11, %v51_v10 }
  0xe9   :  { %v156_v13 = vpop.f32.mrf.mxu0 }
  0xea   :  { %109 = vst.msk [vmem:[#allocation2] sm:$0xff] %vm48_vm0, %v107_v12 }
  0xeb   :  { %v103_v15 = vpop.f32.mrf.mxu0 }
  0xec   :  { %v108_v16 = vadd.f32 %v103_v15, %v52_v14 }
  0xed   :  { %v157_v17 = vpop.f32.mrf.mxu0 }
  0xee   :  { %110 = vst.msk [vmem:[#allocation2 + $0x8] sm:$0xff] %vm48_vm0, %v108_v16 }
  0xf1   :  { %v114_v19 = vld [vmem:[#allocation2] sm:$0xff] }
  0xf2   :  { %v123_v20 = vadd.f32 %v146_v18, %v114_v19 }
  0xf4   :  { %125 = vst.msk [vmem:[#allocation8] sm:$0xff] %vm48_vm0, %v123_v20 }
  0xf5   :  { %v115_v21 = vld [vmem:[#allocation2 + $0x8] sm:$0xff] }
  0xf6   :  { %v124_v22 = vadd.f32 %v146_v18, %v115_v21 }
  0xf8   :  { %126 = vst.msk [vmem:[#allocation8 + $0x8] sm:$0xff] %vm48_vm0, %v124_v22 }
  0xf9   :  { %216 = shalt.err (!%p213_p0)
}
  0xfa   :  { %138 = dma.vmem_to_hbm [thread:$0]  %s133_s25, 256, %s289_s3, [#allocation5], %s232_s15, %s232_s15, %s233_s16  }
  0xfb   :  { %229 = dma.done.wait [#allocation5], 256  }
  0xfc   :  { %230 = vsyncadd [#allocation5], 4294967040 }
  0xfd   :  { %142 = vsyncpa [#allocation4], 1 }
  0xfe   :  { %143 = vsyncpa [#allocation7], 1 }
  0xff   :  { %144 = vsyncpa [#allocation5], 1 }

</bundles_post_ra>
